<compile_context>
chip_gen: v7x
topology: tpu7x:2x2x1
jax: 0.10.0
libtpu: 0.0.40
codegen_flags: <defaults>
</compile_context>

<pallas_src>
import functools

import jax
import jax.numpy as jnp
import numpy as np
from jax.experimental import pallas as pl
from jax.experimental.pallas import tpu as pltpu

NUM_EMBEDDINGS = 500
EMB_DIM = 6
HIDDEN = 50
MAX_TILE = 2048   # v5e scoped-VMEM guardrail (also safe on v6e/v7x)


# --------------------------------------------------------------------------- kernels

def _dqn_mlp_kernel(idx_ref, t_ref, b1_ref, w2_ref, b2_ref, w3_ref, b3_ref,
                    w4_ref, b4_ref, out_ref):
    idx = idx_ref[...]                                        # (TB, 1) int32
    tb = idx.shape[0]
    # In-kernel exact embedding gather: one-hot (TB,500) from iota==idx, one MXU pass
    # against the folded table T = emb @ w1.  Out-of-range indices give an all-zero
    # row (benign; padded batch rows are sliced off in the wrapper).
    iota = jax.lax.broadcasted_iota(jnp.int32, (tb, NUM_EMBEDDINGS), 1)
    onehot = (iota == idx).astype(jnp.float32)                # (TB, 500)
    h = jnp.maximum(
        jnp.dot(onehot, t_ref[...], preferred_element_type=jnp.float32) + b1_ref[...], 0.0)
    h = jnp.maximum(
        jnp.dot(h, w2_ref[...], preferred_element_type=jnp.float32) + b2_ref[...], 0.0)
    h = jnp.maximum(
        jnp.dot(h, w3_ref[...], preferred_element_type=jnp.float32) + b3_ref[...], 0.0)
    out_ref[...] = (
        jnp.dot(h, w4_ref[...], preferred_element_type=jnp.float32) + b4_ref[...])


def _dqn_lut_kernel(idx_ref, lut_ref, out_ref):
    # Fully-folded path: the whole network collapsed into a 500-row lookup table.
    idx = idx_ref[...]                                        # (TB, 1) int32
    tb = idx.shape[0]
    iota = jax.lax.broadcasted_iota(jnp.int32, (tb, NUM_EMBEDDINGS), 1)
    onehot = (iota == idx).astype(jnp.float32)                # (TB, 500)
    out_ref[...] = jnp.dot(onehot, lut_ref[...], preferred_element_type=jnp.float32)


# --------------------------------------------------------------------------- params

def init_params(key, outputs):
    """Deterministic params mimicking PyTorch default inits (shapes from __init__)."""
    ks = jax.random.split(key, 9)
    emb = jax.random.normal(ks[0], (NUM_EMBEDDINGS, EMB_DIM), jnp.float32)  # N(0,1)

    def linear(kw, kb, fan_in, fan_out):
        bound = 1.0 / np.sqrt(fan_in)
        # stored already transposed to (in, out) so the kernel does x @ W
        w = jax.random.uniform(kw, (fan_in, fan_out), jnp.float32, -bound, bound)
        b = jax.random.uniform(kb, (1, fan_out), jnp.float32, -bound, bound)
        return w, b

    w1, b1 = linear(ks[1], ks[2], EMB_DIM, HIDDEN)
    w2, b2 = linear(ks[3], ks[4], HIDDEN, HIDDEN)
    w3, b3 = linear(ks[5], ks[6], HIDDEN, HIDDEN)
    w4, b4 = linear(ks[7], ks[8], HIDDEN, outputs)
    return (emb, w1, b1, w2, b2, w3, b3, w4, b4)


def _pad_last_layer(w4, b4):
    outputs = w4.shape[1]
    out_pad = ((outputs + 127) // 128) * 128
    w4p = jnp.zeros((w4.shape[0], out_pad), jnp.float32).at[:, :outputs].set(w4)
    b4p = jnp.zeros((1, out_pad), jnp.float32).at[:, :outputs].set(b4)
    return w4p, b4p


def prepare_params(params):
    """Run once per weight update: fold emb@w1 and lane-pad the last layer."""
    emb, w1, b1, w2, b2, w3, b3, w4, b4 = params
    t = jnp.dot(emb, w1, preferred_element_type=jnp.float32)          # (500, 50)
    w4p, b4p = _pad_last_layer(w4, b4)
    return (t, b1, w2, b2, w3, b3, w4p, b4p)


def prepare_lut(params):
    """Full fold for frozen weights (target net / pure inference): evaluate all 500
    states through the MLP once; the kernel becomes a single gather-matmul."""
    emb, w1, b1, w2, b2, w3, b3, w4, b4 = params
    outputs = w4.shape[1]
    out_pad = ((outputs + 127) // 128) * 128
    h = jax.nn.relu(emb @ w1 + b1)
    h = jax.nn.relu(h @ w2 + b2)
    h = jax.nn.relu(h @ w3 + b3)
    y = h @ w4 + b4                                                   # (500, outputs)
    return jnp.zeros((NUM_EMBEDDINGS, out_pad), jnp.float32).at[:, :outputs].set(y)


# --------------------------------------------------------------------------- forward

def _pick_tile(batch, block_b):
    # >=2 grid steps when possible (v7x megacore), multiple of 8 sublanes,
    # capped so the v5e 16 MiB scoped-VMEM budget is never exceeded.
    tb = min(block_b, max(8, -(-batch // 2)))
    tb = min(((tb + 7) // 8) * 8, MAX_TILE)
    b_pad = pl.cdiv(batch, tb) * tb
    return tb, b_pad


def _pad_idx(x_idx, b_pad):
    return jnp.zeros((b_pad, 1), jnp.int32).at[:x_idx.shape[0], 0].set(
        x_idx.astype(jnp.int32))


@functools.partial(jax.jit, static_argnames=("outputs", "block_b"))
def dqn_forward(x_idx, prepared, *, outputs, block_b=512):
    """x_idx: int32 state indices (B,). prepared: output of prepare_params().
    Returns (B, outputs) float32."""
    t, b1, w2, b2, w3, b3, w4p, b4p = prepared
    B = x_idx.shape[0]
    out_pad = w4p.shape[1]
    tb, b_pad = _pick_tile(B, block_b)
    idx2d = _pad_idx(x_idx, b_pad)

    resident = lambda shape: pl.BlockSpec(shape, lambda i: (0, 0))   # VMEM-resident

    y = pl.pallas_call(
        _dqn_mlp_kernel,
        out_shape=jax.ShapeDtypeStruct((b_pad, out_pad), jnp.float32),
        grid=(b_pad // tb,),
        in_specs=[
            pl.BlockSpec((tb, 1), lambda i: (i, 0)),        # indices: tiled over batch
            resident((NUM_EMBEDDINGS, HIDDEN)),             # T = emb @ w1
            resident((1, HIDDEN)),
            resident((HIDDEN, HIDDEN)), resident((1, HIDDEN)),
            resident((HIDDEN, HIDDEN)), resident((1, HIDDEN)),
            resident((HIDDEN, out_pad)), resident((1, out_pad)),
        ],
        out_specs=pl.BlockSpec((tb, out_pad), lambda i: (i, 0)),
        compiler_params=pltpu.CompilerParams(
            dimension_semantics=("parallel",)),
    )(idx2d, t, b1, w2, b2, w3, b3, w4p, b4p)

    return y[:B, :outputs]


@functools.partial(jax.jit, static_argnames=("outputs", "block_b"))
def dqn_forward_lut(x_idx, lut, *, outputs, block_b=512):
    """Fully-folded forward for frozen weights. lut: output of prepare_lut()."""
    B = x_idx.shape[0]
    out_pad = lut.shape[1]
    tb, b_pad = _pick_tile(B, block_b)
    idx2d = _pad_idx(x_idx, b_pad)

    y = pl.pallas_call(
        _dqn_lut_kernel,
        out_shape=jax.ShapeDtypeStruct((b_pad, out_pad), jnp.float32),
        grid=(b_pad // tb,),
        in_specs=[
            pl.BlockSpec((tb, 1), lambda i: (i, 0)),
            pl.BlockSpec((NUM_EMBEDDINGS, out_pad), lambda i: (0, 0)),
        ],
        out_specs=pl.BlockSpec((tb, out_pad), lambda i: (i, 0)),
        compiler_params=pltpu.CompilerParams(
            dimension_semantics=("parallel",)),
    )(idx2d, lut)

    return y[:B, :outputs]


# --------------------------------------------------------------------------- reference

def dqn_reference(x_idx, params):
    emb, w1, b1, w2, b2, w3, b3, w4, b4 = params
    e = emb[x_idx]
    h = jax.nn.relu(e @ w1 + b1)
    h = jax.nn.relu(h @ w2 + b2)
    h = jax.nn.relu(h @ w3 + b3)
    return h @ w4 + b4


if __name__ == "__main__":
    key = jax.random.PRNGKey(0)
    k_params, k_x = jax.random.split(key)

    outputs = 6            # e.g. Taxi-v3 action space
    params = init_params(k_params, outputs)
    prepared = prepare_params(params)

    # B=21 with block_b=8 -> padded to 24, 3-step grid (exercises pipelining + padding).
    batch = 21
    x = jax.random.randint(k_x, (batch,), 0, NUM_EMBEDDINGS, dtype=jnp.int32)
    y_ref = dqn_reference(x, params)

    y = jax.block_until_ready(dqn_forward(x, prepared, outputs=outputs, block_b=8))
    np.testing.assert_allclose(np.asarray(y), np.asarray(y_ref), rtol=1e-5, atol=1e-5)

    # Default tile path at a tiny batch (single grid step).
    x2 = x[:8]
    y2 = jax.block_until_ready(dqn_forward(x2, prepared, outputs=outputs))
    np.testing.assert_allclose(np.asarray(y2), np.asarray(dqn_reference(x2, params)),
                               rtol=1e-5, atol=1e-5)

    # Fully-folded LUT path (frozen-weights / target-net inference).
    lut = prepare_lut(params)
    y3 = jax.block_until_ready(dqn_forward_lut(x, lut, outputs=outputs, block_b=8))
    np.testing.assert_allclose(np.asarray(y3), np.asarray(y_ref), rtol=1e-5, atol=1e-5)

    print("KERNEL_OK")
</pallas_src>

<mosaic_0001>
module attributes {stable_mosaic.version = 11 : i64} {
  func.func @_dqn_mlp_kernel(%arg0: i32, %arg1: memref<8x1xi32, #tpu.memory_space<vmem>>, %arg2: memref<500x50xf32, #tpu.memory_space<vmem>>, %arg3: memref<1x50xf32, #tpu.memory_space<vmem>>, %arg4: memref<50x50xf32, #tpu.memory_space<vmem>>, %arg5: memref<1x50xf32, #tpu.memory_space<vmem>>, %arg6: memref<50x50xf32, #tpu.memory_space<vmem>>, %arg7: memref<1x50xf32, #tpu.memory_space<vmem>>, %arg8: memref<50x128xf32, #tpu.memory_space<vmem>>, %arg9: memref<1x128xf32, #tpu.memory_space<vmem>>, %arg10: memref<8x128xf32, #tpu.memory_space<vmem>>) attributes {dimension_semantics = [#tpu.dimension_semantics<parallel>], iteration_bounds = array<i64: 3>, scalar_prefetch = 0 : i64, scratch_operands = 0 : i64, tpu.core_type = #tpu.core_type<tc>, window_params = [{transform_indices = @transform_0, window_bounds = array<i64: 8, 1>}, {pipeline_mode = #tpu.pipeline_mode<synchronous>, transform_indices = @transform_1, window_bounds = array<i64: 500, 50>}, {pipeline_mode = #tpu.pipeline_mode<synchronous>, transform_indices = @transform_2, window_bounds = array<i64: 1, 50>}, {pipeline_mode = #tpu.pipeline_mode<synchronous>, transform_indices = @transform_3, window_bounds = array<i64: 50, 50>}, {pipeline_mode = #tpu.pipeline_mode<synchronous>, transform_indices = @transform_4, window_bounds = array<i64: 1, 50>}, {pipeline_mode = #tpu.pipeline_mode<synchronous>, transform_indices = @transform_5, window_bounds = array<i64: 50, 50>}, {pipeline_mode = #tpu.pipeline_mode<synchronous>, transform_indices = @transform_6, window_bounds = array<i64: 1, 50>}, {pipeline_mode = #tpu.pipeline_mode<synchronous>, transform_indices = @transform_7, window_bounds = array<i64: 50, 128>}, {pipeline_mode = #tpu.pipeline_mode<synchronous>, transform_indices = @transform_8, window_bounds = array<i64: 1, 128>}, {transform_indices = @transform_9, window_bounds = array<i64: 8, 128>}]} {
    %c0 = arith.constant 0 : index
    %c0_0 = arith.constant 0 : index
    %0 = vector.load %arg1[%c0, %c0_0] : memref<8x1xi32, #tpu.memory_space<vmem>>, vector<8x1xi32>
    %1 = tpu.iota {dimensions = array<i32: 1>} : vector<8x500xi32>
    %2 = vector.broadcast %0 : vector<8x1xi32> to vector<8x500xi32>
    %3 = arith.cmpi eq, %1, %2 : vector<8x500xi32>
    %4 = arith.extui %3 : vector<8x500xi1> to vector<8x500xi32>
    %5 = arith.sitofp %4 : vector<8x500xi32> to vector<8x500xf32>
    %c0_1 = arith.constant 0 : index
    %c0_2 = arith.constant 0 : index
    %6 = vector.load %arg2[%c0_1, %c0_2] : memref<500x50xf32, #tpu.memory_space<vmem>>, vector<500x50xf32>
    %cst = arith.constant dense<0.000000e+00> : vector<8x50xf32>
    %7 = tpu.matmul %5, %6, %cst {dimension_numbers = #tpu.dot_dimension_numbers<[1], [0], [0], [1], [0, 0, 1, 1], [], []>} : vector<8x500xf32>, vector<500x50xf32>, vector<8x50xf32> -> vector<8x50xf32>
    %c0_3 = arith.constant 0 : index
    %c0_4 = arith.constant 0 : index
    %8 = vector.load %arg3[%c0_3, %c0_4] : memref<1x50xf32, #tpu.memory_space<vmem>>, vector<1x50xf32>
    %9 = vector.broadcast %8 : vector<1x50xf32> to vector<8x50xf32>
    %10 = arith.addf %7, %9 : vector<8x50xf32>
    %cst_5 = arith.constant 0.000000e+00 : f32
    %11 = vector.broadcast %cst_5 : f32 to vector<8x50xf32>
    %12 = arith.maximumf %10, %11 : vector<8x50xf32>
    %c0_6 = arith.constant 0 : index
    %c0_7 = arith.constant 0 : index
    %13 = vector.load %arg4[%c0_6, %c0_7] : memref<50x50xf32, #tpu.memory_space<vmem>>, vector<50x50xf32>
    %cst_8 = arith.constant dense<0.000000e+00> : vector<8x50xf32>
    %14 = tpu.matmul %12, %13, %cst_8 {dimension_numbers = #tpu.dot_dimension_numbers<[1], [0], [0], [1], [0, 0, 1, 1], [], []>} : vector<8x50xf32>, vector<50x50xf32>, vector<8x50xf32> -> vector<8x50xf32>
    %c0_9 = arith.constant 0 : index
    %c0_10 = arith.constant 0 : index
    %15 = vector.load %arg5[%c0_9, %c0_10] : memref<1x50xf32, #tpu.memory_space<vmem>>, vector<1x50xf32>
    %16 = vector.broadcast %15 : vector<1x50xf32> to vector<8x50xf32>
    %17 = arith.addf %14, %16 : vector<8x50xf32>
    %cst_11 = arith.constant 0.000000e+00 : f32
    %18 = vector.broadcast %cst_11 : f32 to vector<8x50xf32>
    %19 = arith.maximumf %17, %18 : vector<8x50xf32>
    %c0_12 = arith.constant 0 : index
    %c0_13 = arith.constant 0 : index
    %20 = vector.load %arg6[%c0_12, %c0_13] : memref<50x50xf32, #tpu.memory_space<vmem>>, vector<50x50xf32>
    %cst_14 = arith.constant dense<0.000000e+00> : vector<8x50xf32>
    %21 = tpu.matmul %19, %20, %cst_14 {dimension_numbers = #tpu.dot_dimension_numbers<[1], [0], [0], [1], [0, 0, 1, 1], [], []>} : vector<8x50xf32>, vector<50x50xf32>, vector<8x50xf32> -> vector<8x50xf32>
    %c0_15 = arith.constant 0 : index
    %c0_16 = arith.constant 0 : index
    %22 = vector.load %arg7[%c0_15, %c0_16] : memref<1x50xf32, #tpu.memory_space<vmem>>, vector<1x50xf32>
    %23 = vector.broadcast %22 : vector<1x50xf32> to vector<8x50xf32>
    %24 = arith.addf %21, %23 : vector<8x50xf32>
    %cst_17 = arith.constant 0.000000e+00 : f32
    %25 = vector.broadcast %cst_17 : f32 to vector<8x50xf32>
    %26 = arith.maximumf %24, %25 : vector<8x50xf32>
    %c0_18 = arith.constant 0 : index
    %c0_19 = arith.constant 0 : index
    %27 = vector.load %arg8[%c0_18, %c0_19] : memref<50x128xf32, #tpu.memory_space<vmem>>, vector<50x128xf32>
    %cst_20 = arith.constant dense<0.000000e+00> : vector<8x128xf32>
    %28 = tpu.matmul %26, %27, %cst_20 {dimension_numbers = #tpu.dot_dimension_numbers<[1], [0], [0], [1], [0, 0, 1, 1], [], []>} : vector<8x50xf32>, vector<50x128xf32>, vector<8x128xf32> -> vector<8x128xf32>
    %c0_21 = arith.constant 0 : index
    %c0_22 = arith.constant 0 : index
    %29 = vector.load %arg9[%c0_21, %c0_22] : memref<1x128xf32, #tpu.memory_space<vmem>>, vector<1x128xf32>
    %30 = vector.broadcast %29 : vector<1x128xf32> to vector<8x128xf32>
    %31 = arith.addf %28, %30 : vector<8x128xf32>
    %c0_23 = arith.constant 0 : index
    %c0_24 = arith.constant 0 : index
    %32 = vector.load %arg10[%c0_23, %c0_24] : memref<8x128xf32, #tpu.memory_space<vmem>>, vector<8x128xf32>
    tpu.vector_store %arg10[%c0_23, %c0_24], %31 {strides = array<i32>} : memref<8x128xf32, #tpu.memory_space<vmem>>, vector<8x128xf32>,
    return
  }
  func.func @transform_0(%arg0: i32) -> (i32, i32) {
    %c0_i32 = arith.constant 0 : i32
    %c0_i32_0 = arith.constant 0 : i32
    return %arg0, %c0_i32 : i32, i32
  }
  func.func @transform_1(%arg0: i32) -> (i32, i32) {
    %c0_i32 = arith.constant 0 : i32
    %c0_i32_0 = arith.constant 0 : i32
    %c0_i32_1 = arith.constant 0 : i32
    return %c0_i32, %c0_i32_0 : i32, i32
  }
  func.func @transform_2(%arg0: i32) -> (i32, i32) {
    %c0_i32 = arith.constant 0 : i32
    %c0_i32_0 = arith.constant 0 : i32
    %c0_i32_1 = arith.constant 0 : i32
    return %c0_i32, %c0_i32_0 : i32, i32
  }
  func.func @transform_3(%arg0: i32) -> (i32, i32) {
    %c0_i32 = arith.constant 0 : i32
    %c0_i32_0 = arith.constant 0 : i32
    %c0_i32_1 = arith.constant 0 : i32
    return %c0_i32, %c0_i32_0 : i32, i32
  }
  func.func @transform_4(%arg0: i32) -> (i32, i32) {
    %c0_i32 = arith.constant 0 : i32
    %c0_i32_0 = arith.constant 0 : i32
    %c0_i32_1 = arith.constant 0 : i32
    return %c0_i32, %c0_i32_0 : i32, i32
  }
  func.func @transform_5(%arg0: i32) -> (i32, i32) {
    %c0_i32 = arith.constant 0 : i32
    %c0_i32_0 = arith.constant 0 : i32
    %c0_i32_1 = arith.constant 0 : i32
    return %c0_i32, %c0_i32_0 : i32, i32
  }
  func.func @transform_6(%arg0: i32) -> (i32, i32) {
    %c0_i32 = arith.constant 0 : i32
    %c0_i32_0 = arith.constant 0 : i32
    %c0_i32_1 = arith.constant 0 : i32
    return %c0_i32, %c0_i32_0 : i32, i32
  }
  func.func @transform_7(%arg0: i32) -> (i32, i32) {
    %c0_i32 = arith.constant 0 : i32
    %c0_i32_0 = arith.constant 0 : i32
    %c0_i32_1 = arith.constant 0 : i32
    return %c0_i32, %c0_i32_0 : i32, i32
  }
  func.func @transform_8(%arg0: i32) -> (i32, i32) {
    %c0_i32 = arith.constant 0 : i32
    %c0_i32_0 = arith.constant 0 : i32
    %c0_i32_1 = arith.constant 0 : i32
    return %c0_i32, %c0_i32_0 : i32, i32
  }
  func.func @transform_9(%arg0: i32) -> (i32, i32) {
    %c0_i32 = arith.constant 0 : i32
    %c0_i32_0 = arith.constant 0 : i32
    return %arg0, %c0_i32 : i32, i32
  }
}

</mosaic_0001>

<bundles_post_ra>
// kernel: dqn_forward.1
= control target key start
LH: loop header
LB: loop body
LE: loop exit
PB: predicated region body
PF: predicated region fallthrough
CT: control target
= control target key end

     0   :  { %s1215_s30 = smov 0   ;;  %s1544_s0 = inlined_call_operand.vmem [shape: s32[24,1], index: 0, kind: input, shape index: {}]   ;;  %s1545_s1 = inlined_call_operand.vmem [shape: f32[500,50], index: 1, kind: input, shape index: {}]   ;;  %s1546_s2 = inlined_call_operand.vmem [shape: f32[1,50], index: 2, kind: input, shape index: {}]   ;;  %s1547_s3 = inlined_call_operand.vmem [shape: f32[50,50], index: 3, kind: input, shape index: {}]   ;;  %s1548_s4 = inlined_call_operand.vmem [shape: f32[1,50], index: 4, kind: input, shape index: {}]   ;;  %s1549_s5 = inlined_call_operand.vmem [shape: f32[50,50], index: 5, kind: input, shape index: {}]   ;;  %s1550_s6 = inlined_call_operand.vmem [shape: f32[1,50], index: 6, kind: input, shape index: {}]   ;;  %s1551_s7 = inlined_call_operand.vmem [shape: f32[50,128], index: 7, kind: input, shape index: {}]   ;;  %s1552_s8 = inlined_call_operand.vmem [shape: f32[1,128], index: 8, kind: input, shape index: {}]   ;;  %s1553_s9 = inlined_call_operand.vmem [shape: f32[24,128], index: 9, kind: output, shape index: {}]  }
   0x1 LB: > { %s896_s10 = sadd.s32 4294967295, %s1158_s30   ;;  %p900_p0 = scmp.ge.s32.totalorder %s1158_s30, 1  ;;  %s1158_s30 = sphi %s1215_s30, %s19_s30  }
   0x2   : > { %p286_p1 = scmp.lt.s32.totalorder %s1158_s30, 4 }
   0x4   : > { %p287_p2 = pnand %p900_p0, %p286_p1 }
   0x5   : > { %p320_p3 = scmp.lt.s32.totalorder (!%p287_p2), %s896_s10, 2  ;;  %v381_v0 = vld [vmem:[%s1545_s1 + $0x100] sm:$0xff] (!%p287_p2)  ;;  %v382_v1 = vld [vmem:[%s1545_s1 + $0x108] sm:$0xff] (!%p287_p2)  ;;  %v383_v2 = vld [vmem:[%s1545_s1 + $0x110] sm:$0xff] (!%p287_p2)  ;;  %v1160_v3 = vmov (!%p287_p2), 0   ;;  %v1161_v4 = vmov (!%p287_p2), 0.0|0.0  }
   0x6   : > { %290 = sbr.rel (%p287_p2) target bundleno = 1015 (0x3f7), region = 56  ;;  %1151 = vset.pattern.permute.xlu0 (!%p287_p2), %v1160_v3  ;;  %1066 = vmatprep.subr.bf16.mxu1 (!%p287_p2), %v1161_v4  ;;  %v1067_v5 = vpack.c.bf16 (!%p287_p2), %v382_v1, %v381_v0  ;;  %v384_v6 = vld [vmem:[%s1545_s1 + $0x118] sm:$0xff] (!%p287_p2)  ;;  %v385_v8 = vld [vmem:[%s1545_s1 + $0x120] sm:$0xff] (!%p287_p2)  ;;  %v386_v9 = vld [vmem:[%s1545_s1 + $0x128] sm:$0xff] (!%p287_p2)  ;;  %vm423_vm0 = vcmask (!%p287_p2), 1043456   ;;  %vm419_vm1 = vcmask (!%p287_p2), 949248  }
   0x7   : > { %v1070_v7 = vpack.c.bf16 (!%p287_p2), %v384_v6, %v383_v2  ;;  %v365_v10 = vld [vmem:[%s1545_s1 + $0x80] sm:$0xff] (!%p287_p2)  ;;  %v366_v11 = vld [vmem:[%s1545_s1 + $0x88] sm:$0xff] (!%p287_p2)  ;;  %v1073_v16 = vpack.c.bf16 (!%p287_p2), %v386_v9, %v385_v8  ;;  %v387_v17 = vld [vmem:[%s1545_s1 + $0x130] sm:$0xff] (!%p287_p2)  ;;  %vm586_vm6 = vcmask (!%p287_p2), 1041408   ;;  %vm1164_vm7 = vmmov (!%p287_p2), 0  }
   0x8   : > { %1068 = vmatpush1.bf16.msra.mxu1 (!%p287_p2), %v1067_v5  ;;  %v1034_v13 = vpack.c.bf16 (!%p287_p2), %v366_v11, %v365_v10  ;;  %v349_v14 = vld [vmem:[%s1545_s1] sm:$0xff] (!%p287_p2)  ;;  %v350_v15 = vld [vmem:[%s1545_s1 + $0x8] sm:$0xff] (!%p287_p2)  ;;  %v367_v19 = vld [vmem:[%s1545_s1 + $0x90] sm:$0xff] (!%p287_p2)  ;;  %vm582_vm8 = vcmask (!%p287_p2), 408576  }
   0x9   : > { %1069 = vmatprep.subr.bf16.mxu1 (!%p287_p2), %v1161_v4  ;;  %v1036_v18 = vpack.c.bf16 (!%p287_p2), %v350_v15, %v349_v14  ;;  %v368_v20 = vld [vmem:[%s1545_s1 + $0x98] sm:$0xff] (!%p287_p2)  ;;  %v351_v23 = vld [vmem:[%s1545_s1 + $0x10] sm:$0xff] (!%p287_p2)  ;;  %v369_v26 = vld [vmem:[%s1545_s1 + $0xa0] sm:$0xff] (!%p287_p2) }
   0xa   : > { %v388_v21 = vld [vmem:[%s1545_s1 + $0x138] sm:$0xff] (!%p287_p2)  ;;  %1035 = vmatprep.subr.bf16.mxu0 (!%p287_p2), %v1034_v13  ;;  %v1038_v22 = vpack.c.bf16 (!%p287_p2), %v368_v20, %v367_v19  ;;  %v370_v27 = vld [vmem:[%s1545_s1 + $0xa8] sm:$0xff] (!%p287_p2)  ;;  %v353_v29 = vld [vmem:[%s1545_s1 + $0x20] sm:$0xff] (!%p287_p2) }
   0xb   : > { %v352_v24 = vld [vmem:[%s1545_s1 + $0x18] sm:$0xff] (!%p287_p2)  ;;  %1037 = vmatpush3.bf16.msra.mxu0 (!%p287_p2), %v1036_v18  ;;  %v1042_v28 = vpack.c.bf16 (!%p287_p2), %v370_v27, %v369_v26  ;;  %v354_v30 = vld [vmem:[%s1545_s1 + $0x28] sm:$0xff] (!%p287_p2)  ;;  %v1076_v31 = vpack.c.bf16 (!%p287_p2), %v388_v21, %v387_v17  ;;  %v371_v32 = vld [vmem:[%s1545_s1 + $0xb0] sm:$0xff] (!%p287_p2) }
   0xc   : > { %1071 = vmatpush1.bf16.msra.mxu1 (!%p287_p2), %v1070_v7  ;;  %v1040_v25 = vpack.c.bf16 (!%p287_p2), %v352_v24, %v351_v23  ;;  %1039 = vmatprep.subr.bf16.mxu0 (!%p287_p2), %v1038_v22  ;;  %v372_v33 = vld [vmem:[%s1545_s1 + $0xb8] sm:$0xff] (!%p287_p2)  ;;  %v389_v34 = vld [vmem:[%s1545_s1 + $0x140] sm:$0xff] (!%p287_p2)  ;;  %v390_v35 = vld [vmem:[%s1545_s1 + $0x148] sm:$0xff] (!%p287_p2)  ;;  %v1044_v36 = vpack.c.bf16 (!%p287_p2), %v354_v30, %v353_v29 }
   0xd   : > { %s1555_s10 = smov (!%p320_p3, %s896_s10), 2  ;;  %1072 = vmatprep.subr.bf16.mxu1 %v1161_v4  ;;  %v1046_v37 = vpack.c.bf16 %v372_v33, %v371_v32  ;;  %v355_v38 = vld [vmem:[%s1545_s1 + $0x30] sm:$0xff]  ;;  %v356_v39 = vld [vmem:[%s1545_s1 + $0x38] sm:$0xff]  ;;  %v1079_v40 = vpack.c.bf16 %v390_v35, %v389_v34  ;;  %v373_v41 = vld [vmem:[%s1545_s1 + $0xc0] sm:$0xff]  ;;  %v1162_v33 = vmov 0.0   ;;  %v329_v35 = vlaneseq }
   0xe   : > { %s901_s19 = sshll.u32 %s1555_s10, 3  ;;  %v374_v42 = vld [vmem:[%s1545_s1 + $0xc8] sm:$0xff]  ;;  %v391_v43 = vld [vmem:[%s1545_s1 + $0x150] sm:$0xff]  ;;  %v392_v44 = vld [vmem:[%s1545_s1 + $0x158] sm:$0xff]  ;;  %v1048_v45 = vpack.c.bf16 %v356_v39, %v355_v38 }
   0xf   : > { %s323_s28 = scalar_lea.vmem %s1544_s0, %s901_s19  ;;  %1041 = vmatpush3.bf16.msra.mxu0 %v1040_v25  ;;  %v1050_v46 = vpack.c.bf16 %v374_v42, %v373_v41  ;;  %v357_v47 = vld [vmem:[%s1545_s1 + $0x40] sm:$0xff]  ;;  %v358_v48 = vld [vmem:[%s1545_s1 + $0x48] sm:$0xff]  ;;  %v1082_v49 = vpack.c.bf16 %v392_v44, %v391_v43  ;;  %v375_v50 = vld [vmem:[%s1545_s1 + $0xd0] sm:$0xff]  ;;  %v1163_v44 = vmov 1.0   ;;  %s327_s12 = scalar_lea.vmem %s1553_s9, %s901_s19 }
  0x10   : > { %v328_v12 = vld [vmem:[%s323_s28] sm:$0xff]  ;;  %1074 = vmatpush1.bf16.msra.mxu1 %v1073_v16  ;;  %1043 = vmatprep.subr.bf16.mxu0 %v1042_v28  ;;  %v376_v51 = vld [vmem:[%s1545_s1 + $0xd8] sm:$0xff]  ;;  %v394_v53 = vld [vmem:[%s1545_s1 + $0x168] sm:$0xff]  ;;  %v1052_v54 = vpack.c.bf16 %v358_v48, %v357_v47 }
  0x11   : > { %335 = vperm.xlu0 %1151, %v328_v12   ;;  %1075 = vmatprep.subr.bf16.mxu1 %v1161_v4  ;;  %v393_v52 = vld [vmem:[%s1545_s1 + $0x160] sm:$0xff]  ;;  %v1054_v55 = vpack.c.bf16 %v376_v51, %v375_v50  ;;  %v359_v56 = vld [vmem:[%s1545_s1 + $0x50] sm:$0xff]  ;;  %v360_v57 = vld [vmem:[%s1545_s1 + $0x58] sm:$0xff] }
  0x12   : > { %v1085_v58 = vpack.c.bf16 %v394_v53, %v393_v52  ;;  %v377_v59 = vld [vmem:[%s1545_s1 + $0xe0] sm:$0xff]  ;;  %v378_v60 = vld [vmem:[%s1545_s1 + $0xe8] sm:$0xff]  ;;  %v395_v61 = vld [vmem:[%s1545_s1 + $0x170] sm:$0xff]  ;;  %v1056_v63 = vpack.c.bf16 %v360_v57, %v359_v56 }
  0x13   : > { %1045 = vmatpush3.bf16.msra.mxu0 %v1044_v36  ;;  %v396_v62 = vld [vmem:[%s1545_s1 + $0x178] sm:$0xff]  ;;  %v1058_v0 = vpack.c.bf16 %v378_v60, %v377_v59  ;;  %v361_v1 = vld [vmem:[%s1545_s1 + $0x60] sm:$0xff]  ;;  %v362_v2 = vld [vmem:[%s1545_s1 + $0x68] sm:$0xff]  ;;  %v330_v36 = vand.u32 127, %v329_v35 }
  0x14   : > { %1077 = vmatpush1.bf16.msra.mxu1 %v1076_v31  ;;  %1047 = vmatprep.subr.bf16.mxu0 %v1046_v37  ;;  %v1088_v3 = vpack.c.bf16 %v396_v62, %v395_v61  ;;  %v379_v5 = vld [vmem:[%s1545_s1 + $0xf0] sm:$0xff]  ;;  %v380_v6 = vld [vmem:[%s1545_s1 + $0xf8] sm:$0xff]  ;;  %v397_v7 = vld [vmem:[%s1545_s1 + $0x180] sm:$0xff]  ;;  %v1060_v9 = vpack.c.bf16 %v362_v2, %v361_v1 }
  0x15   : > { %1078 = vmatprep.subr.bf16.mxu1 %v1161_v4  ;;  %v398_v8 = vld [vmem:[%s1545_s1 + $0x188] sm:$0xff]  ;;  %v1062_v10 = vpack.c.bf16 %v380_v6, %v379_v5  ;;  %v363_v11 = vld [vmem:[%s1545_s1 + $0x70] sm:$0xff]  ;;  %v364_v12 = vld [vmem:[%s1545_s1 + $0x78] sm:$0xff]  ;;  %v331_v37 = vadd.s32 128, %v330_v36  ;;  %v333_v38 = vadd.s32 384, %v330_v36  ;;  %v332_v41 = vadd.s32 256, %v330_v36 }
  0x16   : > { %v1091_v13 = vpack.c.bf16 %v398_v8, %v397_v7  ;;  %v399_v14 = vld [vmem:[%s1545_s1 + $0x190] sm:$0xff]  ;;  %v400_v15 = vld [vmem:[%s1545_s1 + $0x198] sm:$0xff]  ;;  %v1064_v16 = vpack.c.bf16 %v364_v12, %v363_v11  ;;  %v401_v18 = vld [vmem:[%s1545_s1 + $0x1a0] sm:$0xff] }
  0x17   : > { %1049 = vmatpush3.bf16.msra.mxu0 %v1048_v45  ;;  %v1094_v17 = vpack.c.bf16 %v400_v15, %v399_v14  ;;  %v402_v19 = vld [vmem:[%s1545_s1 + $0x1a8] sm:$0xff]  ;;  %v403_v21 = vld [vmem:[%s1545_s1 + $0x1b0] sm:$0xff]  ;;  %v404_v22 = vld [vmem:[%s1545_s1 + $0x1b8] sm:$0xff] }
  0x18   : > { %1080 = vmatpush1.bf16.msra.mxu1 %v1079_v40  ;;  %1051 = vmatprep.subr.bf16.mxu0 %v1050_v46  ;;  %v1097_v20 = vpack.c.bf16 %v402_v19, %v401_v18  ;;  %v1100_v23 = vpack.c.bf16 %v404_v22, %v403_v21  ;;  %v405_v24 = vld [vmem:[%s1545_s1 + $0x1c0] sm:$0xff]  ;;  %v406_v25 = vld [vmem:[%s1545_s1 + $0x1c8] sm:$0xff]  ;;  %v407_v27 = vld [vmem:[%s1545_s1 + $0x1d0] sm:$0xff] }
  0x19   : > { %1081 = vmatprep.subr.bf16.mxu1 %v1161_v4  ;;  %v1103_v26 = vpack.c.bf16 %v406_v25, %v405_v24  ;;  %v408_v28 = vld [vmem:[%s1545_s1 + $0x1d8] sm:$0xff]  ;;  %v409_v30 = vld [vmem:[%s1545_s1 + $0x1e0] sm:$0xff]  ;;  %v410_v31 = vld [vmem:[%s1545_s1 + $0x1e8] sm:$0xff] }
  0x1a   : > { %v1106_v29 = vpack.c.bf16 %v408_v28, %v407_v27  ;;  %v1109_v32 = vpack.c.bf16 %v410_v31, %v409_v30  ;;  %v411_v34 = vld [vmem:[%s1545_s1 + $0x1f0] sm:$0xf]  ;;  %v568_v39 = vld [vmem:[%s1547_s3] sm:$0xff]  ;;  %v569_v40 = vld [vmem:[%s1547_s3 + $0x8] sm:$0xff] }
  0x1b   : > { %1053 = vmatpush3.bf16.msra.mxu0 %v1052_v54  ;;  %v1112_v43 = vpack.c.bf16 %v569_v40, %v568_v39  ;;  %v570_v46 = vld [vmem:[%s1547_s3 + $0x10] sm:$0xff]  ;;  %v571_v47 = vld [vmem:[%s1547_s3 + $0x18] sm:$0xff]  ;;  %v573_v50 = vld [vmem:[%s1547_s3 + $0x28] sm:$0xff] }
  0x1c   : > { %1083 = vmatpush1.bf16.msra.mxu1 %v1082_v49  ;;  %1055 = vmatprep.subr.bf16.mxu0 %v1054_v55  ;;  %v1115_v48 = vpack.c.bf16 %v571_v47, %v570_v46  ;;  %v572_v49 = vld [vmem:[%s1547_s3 + $0x20] sm:$0xff]  ;;  %v574_v52 = vld [vmem:[%s1547_s3 + $0x30] sm:$0x3]  ;;  %v662_v61 = vld [vmem:[%s1549_s5 + $0x8] sm:$0xff] }
  0x1d   : > { %1084 = vmatprep.subr.bf16.mxu1 %v1161_v4  ;;  %v1118_v51 = vpack.c.bf16 %v573_v50, %v572_v49  ;;  %v907_v55 = vld [vmem:[%s1546_s2] ss:$0 sm:$0xff]  ;;  %v663_v1 = vld [vmem:[%s1549_s5 + $0x10] sm:$0xff]  ;;  %v664_v2 = vld [vmem:[%s1549_s5 + $0x18] sm:$0xff] }
  0x1e   : > { %v661_v60 = vld [vmem:[%s1549_s5] sm:$0xff]  ;;  %v666_v6 = vld [vmem:[%s1549_s5 + $0x28] sm:$0xff]  ;;  %v667_v8 = vld [vmem:[%s1549_s5 + $0x30] sm:$0x3] }
  0x1f   : > { %1057 = vmatpush3.bf16.msra.mxu0 %v1056_v63  ;;  %v1121_v63 = vpack.c.bf16 %v662_v61, %v661_v60  ;;  %v665_v5 = vld [vmem:[%s1549_s5 + $0x20] sm:$0xff]  ;;  %v753_v11 = vld [vmem:[%s1551_s7 + $0x8] sm:$0xff]  ;;  %v755_v18 = vld [vmem:[%s1551_s7 + $0x18] sm:$0xff] }
  0x20   : > { %1086 = vmatpush1.bf16.msra.mxu1 %v1085_v58  ;;  %1059 = vmatprep.subr.bf16.mxu0 %v1058_v0  ;;  %v1127_v7 = vpack.c.bf16 %v666_v6, %v665_v5  ;;  %v757_v21 = vld [vmem:[%s1551_s7 + $0x28] sm:$0xff]  ;;  %v919_v28 = vld [vmem:[%s1552_s8] ss:$0 sm:$0xff] }
  0x21   : > { %1087 = vmatprep.subr.bf16.mxu1 %v1161_v4 }
  0x23   : > { %1061 = vmatpush3.bf16.msra.mxu0 %v1060_v9  ;;  %v913_v9 = vld [vmem:[%s1548_s4] ss:$0 sm:$0xff] }
  0x24   : > { %1089 = vmatpush1.bf16.msra.mxu1 %v1088_v3  ;;  %1063 = vmatprep.subr.bf16.mxu0 %v1062_v10  ;;  %v1124_v3 = vpack.c.bf16 %v664_v2, %v663_v1  ;;  %v752_v10 = vld [vmem:[%s1551_s7] sm:$0xff] }
  0x25   : > { %1090 = vmatprep.subr.bf16.mxu1 %v1161_v4  ;;  %v1130_v15 = vpack.c.bf16 %v753_v11, %v752_v10 }
  0x27   : > { %1065 = vmatpush3.bf16.msra.mxu0 %v1064_v16 }
  0x28   : > { %1092 = vmatpush1.bf16.msra.mxu1 %v1091_v13  ;;  %1111 = vmatprep.subr.bf16.mxu0 %v1161_v4 }
  0x29   : > { %1093 = vmatprep.subr.bf16.mxu1 %v1161_v4 }
  0x2c   : > { %1095 = vmatpush1.bf16.msra.mxu1 %v1094_v17  ;;  %v754_v17 = vld [vmem:[%s1551_s7 + $0x10] sm:$0xff] }
  0x2d   : > { %1096 = vmatprep.subr.bf16.mxu1 %v1161_v4  ;;  %v1133_v19 = vpack.c.bf16 %v755_v18, %v754_v17 }
  0x30   : > { %1098 = vmatpush1.bf16.msra.mxu1 %v1097_v20  ;;  %v756_v20 = vld [vmem:[%s1551_s7 + $0x20] sm:$0xff] }
  0x31   : > { %1099 = vmatprep.subr.bf16.mxu1 %v1161_v4  ;;  %v1136_v22 = vpack.c.bf16 %v757_v21, %v756_v20 }
  0x34   : > { %1101 = vmatpush1.bf16.msra.mxu1 %v1100_v23  ;;  %v758_v23 = vld [vmem:[%s1551_s7 + $0x30] sm:$0x3] }
  0x35   : > { %1102 = vmatprep.subr.bf16.mxu1 %v1161_v4 }
  0x38   : > { %1104 = vmatpush1.bf16.msra.mxu1 %v1103_v26 }
  0x39   : > { %1105 = vmatprep.subr.bf16.mxu1 %v1161_v4 }
  0x3c   : > { %1107 = vmatpush1.bf16.msra.mxu1 %v1106_v29 }
  0x3d   : > { %1108 = vmatprep.subr.bf16.mxu1 %v1161_v4 }
  0x40   : > { %1110 = vmatpush1.bf16.msra.mxu1 %v1109_v32 }
  0x41   : > { %557 = vmatprep.subr.mxu1 %v1162_v33 }
  0x44   : > { %910 = vmatpush1.msk.msra.mxu1 %vm423_vm0, %v411_v34 }
  0x90   : > { %v336_v42 = vpop.permute.xlu0 %335 }
  0x91   : > { %vm338_vm2 = vcmp.eq.s32.totalorder %v331_v37, %v336_v42  ;;  %vm337_vm3 = vcmp.eq.s32.totalorder %v330_v36, %v336_v42  ;;  %vm340_vm4 = vcmp.eq.s32.totalorder %v333_v38, %v336_v42  ;;  %vm339_vm5 = vcmp.eq.s32.totalorder %v332_v41, %v336_v42 }
  0x92   : > { %908 = vmatprep.mubr.msk.f32.mxu0 %vm338_vm2, %v1163_v44  ;;  %v906_v45 = vsel %vm340_vm4, 1.0, %v1162_v33 }
  0x93   : > { %909 = vmatmul.mubr.msk.f32.vlgmr.msra.gmra.mrb[0].mxu0 %vm337_vm3, %v1163_v44  ;;  %911 = vmatprep.mubr.msk.f32.mxu1 %vm419_vm1, %v906_v45 }
  0x94   : > { %912 = vmatmul.mubr.msk.f32.vlgmr.msra.gmra.mrb[0].mxu1 %vm339_vm5, %v1163_v44  ;;  %1113 = vmatpush3.bf16.msra.mxu0 %v1112_v43 }
  0x95   : > { %1114 = vmatprep.subr.bf16.mxu0 %v1161_v4  ;;  %997 = vmatprep.mubr.msk.f32.mxu0 %vm1164_vm7, %v1162_v33 }
  0x98   : > { %1116 = vmatpush3.bf16.msra.mxu0 %v1115_v48 }
  0x99   : > { %1117 = vmatprep.subr.bf16.mxu0 %v1161_v4 }
  0x9c   : > { %1119 = vmatpush3.bf16.msra.mxu0 %v1118_v51 }
  0x9d   : > { %995 = vmatprep.subr.mxu0 %v1162_v33 }
  0xa0   : > { %996 = vmatpush3.msk.msra.mxu0 %vm586_vm6, %v574_v52 }
  0xa1   : > { %1120 = vmatprep.subr.bf16.mxu0 %v1161_v4 }
 0x166   : > { %v956_v53 = vpop.f32.mrb[0].mxu0 }
 0x167   : > { %v957_v54 = vpop.f32.mrb[1].mxu0  ;;  %v563_v56 = vpop.f32.mrb[0].mxu1 }
 0x168   : > { %v958_v57 = vadd.f32 %v957_v54, %v956_v53  ;;  %v565_v58 = vpop.f32.mrb[1].mxu1 }
 0x16a   : > { %v494_v59 = vadd.f32 %v958_v57, %v907_v55 }
 0x16c   : > { %v564_v62 = vadd.f32 %v563_v56, %v494_v59 }
 0x16e   : > { %v567_v0 = vmax.f32 %v564_v62, 0.0 }
 0x170   : > { %998 = vmatmul.mubr.msk.f32.vlgmr.msra.gmra.mrb[2].mxu0 %vm582_vm8, %v567_v0 }
 0x171   : > { %1122 = vmatpush3.bf16.msra.mxu0 %v1121_v63  ;;  %1014 = vmatprep.mubr.msk.f32.mxu0 %vm1164_vm7, %v1162_v33 }
 0x172   : > { %1123 = vmatprep.subr.bf16.mxu0 %v1161_v4 }
 0x175   : > { %1125 = vmatpush3.bf16.msra.mxu0 %v1124_v3 }
 0x176   : > { %1126 = vmatprep.subr.bf16.mxu0 %v1161_v4 }
 0x179   : > { %1128 = vmatpush3.bf16.msra.mxu0 %v1127_v7 }
 0x17a   : > { %1012 = vmatprep.subr.mxu0 %v1162_v33 }
 0x17d   : > { %1013 = vmatpush3.msk.msra.mxu0 %vm586_vm6, %v667_v8 }
 0x17e   : > { %1129 = vmatprep.subr.bf16.mxu0 %v1161_v4 }
 0x243   : > { %v656_v12 = vpop.f32.mrb[2].mxu0 }
 0x244   : > { %v657_v13 = vadd.f32 %v913_v9, %v656_v12  ;;  %v999_v14 = vpop.f32.mrb[3].mxu0 }
 0x246   : > { %v660_v16 = vmax.f32 %v657_v13, 0.0 }
 0x248   : > { %1015 = vmatmul.mubr.msk.f32.vlgmr.msra.gmra.mrb[4].mxu0 %vm582_vm8, %v660_v16 }
 0x249   : > { %1131 = vmatpush3.bf16.msra.mxu0 %v1130_v15  ;;  %1031 = vmatprep.mubr.msk.f32.mxu0 %vm1164_vm7, %v1162_v33 }
 0x24a   : > { %1132 = vmatprep.subr.bf16.mxu0 %v1161_v4 }
 0x24d   : > { %1134 = vmatpush3.bf16.msra.mxu0 %v1133_v19 }
 0x24e   : > { %1135 = vmatprep.subr.bf16.mxu0 %v1161_v4  ;;  %v916_v4 = vld [vmem:[%s1550_s6] ss:$0 sm:$0xff] }
 0x251   : > { %1137 = vmatpush3.bf16.msra.mxu0 %v1136_v22 }
 0x252   : > { %1029 = vmatprep.subr.mxu0 %v1162_v33 }
 0x255   : > { %1030 = vmatpush3.msk.msra.mxu0 %vm586_vm6, %v758_v23 }
 0x31b   : > { %v747_v24 = vpop.f32.mrb[4].mxu0 }
 0x31c   : > { %v748_v25 = vadd.f32 %v916_v4, %v747_v24  ;;  %v1016_v26 = vpop.f32.mrb[5].mxu0 }
 0x31e   : > { %v751_v27 = vmax.f32 %v748_v25, 0.0 }
 0x320   : > { %1032 = vmatmul.mubr.msk.f32.vlgmr.msra.gmra.mrb[6].mxu0 %vm582_vm8, %v751_v27 }
 0x3f3   : > { %v838_v29 = vpop.f32.mrb[6].mxu0 }
 0x3f4   : > { %v839_v30 = vadd.f32 %v919_v28, %v838_v29  ;;  %v1033_v31 = vpop.f32.mrb[7].mxu0 }
 0x3f6   : > { %842 = vst [vmem:[%s327_s12] sm:$0xff] %v839_v30 }
 0x3f7 PF: > { %s19_s30 = sadd.s32 1, %s1158_s30  }
 0x3f8   : > { %p16_p4 = scmp.ge.s32.totalorder %s19_s30, 5  }
 0x3fa   :  { %18 = sbr.rel (!%p16_p4) target bundleno = 1 (0x1), region = 86 }

</bundles_post_ra>
